<compile_context>
chip_gen: v7x
topology: tpu7x:2x2x1
jax: 0.10.0
libtpu: 0.0.40
codegen_flags: <defaults>
</compile_context>

<pallas_src>
import jax
import jax.numpy as jnp
from jax.experimental import pallas as pl
from jax.experimental.pallas import tpu as pltpu

_LANES = 128      # lane width / padded feature dim
_SUBLANES = 8     # sublane alignment for the batch tile


def _round_up(x, m):
    return ((x + m - 1) // m) * m


def _mlp_kernel(x_ref, w0_ref, w12_ref, b_ref, o_ref):
    # layer 0 (no activation before it, matching the reference forward)
    h = jnp.dot(x_ref[...], w0_ref[...],
                preferred_element_type=jnp.float32) + b_ref[0]
    # tanh -> layer 1
    h = jnp.tanh(h)
    h = jnp.dot(h, w12_ref[0],
                preferred_element_type=jnp.float32) + b_ref[1]
    # tanh -> layer 2 (value head, no final activation); lane-dense store
    h = jnp.tanh(h)
    o_ref[...] = jnp.dot(h, w12_ref[1],
                         preferred_element_type=jnp.float32) + b_ref[2]


def pack_params(params):
    """Pad/stack ((w0,b0),(w1,b1),(w2,b2)) into lane-dense kernel operands.

    Assumes exactly 3 linear layers with hidden/output widths <= 128
    (the PPO lunar-lander value net). Weights are [in, out], biases [1, out].
    """
    (w0, b0), (w1, b1), (w2, b2) = params
    in_pad = _round_up(w0.shape[0], _SUBLANES)
    h = _LANES

    def pad2(a, rows, cols):
        a = a.astype(jnp.float32)
        return jnp.pad(a, ((0, rows - a.shape[0]), (0, cols - a.shape[1])))

    w0p = pad2(w0, in_pad, h)                                   # [in_pad, 128]
    w12 = jnp.stack([pad2(w1, h, h), pad2(w2, h, h)])           # [2, 128, 128]
    bs = jnp.stack([pad2(b0, 1, h), pad2(b1, 1, h),
                    pad2(b2, 1, h)])                            # [3, 1, 128]
    return w0p, w12, bs


def nn_v_forward(x, params, *, max_tile_b=512):
    """Fused MLP forward. x: [batch, in_size]; returns [batch, out_size] f32."""
    (w0, _), _, (w2, _) = params
    in_size = w0.shape[0]
    out_size = w2.shape[1]
    batch = x.shape[0]

    w0p, w12, bs = pack_params(params)
    in_pad = w0p.shape[0]

    # Batch tile: multiple of 8 sublanes, capped so VMEM stays tiny everywhere.
    tile_b = min(max_tile_b, _round_up(batch, _SUBLANES))
    batch_pad = _round_up(batch, tile_b)

    x_pad = jnp.pad(x.astype(jnp.float32),
                    ((0, batch_pad - batch), (0, in_pad - in_size)))

    out = pl.pallas_call(
        _mlp_kernel,
        out_shape=jax.ShapeDtypeStruct((batch_pad, _LANES), jnp.float32),
        grid=(batch_pad // tile_b,),
        in_specs=[
            pl.BlockSpec((tile_b, in_pad), lambda i: (i, 0)),        # x tiles
            pl.BlockSpec((in_pad, _LANES), lambda i: (0, 0)),        # w0 (resident)
            pl.BlockSpec((2, _LANES, _LANES), lambda i: (0, 0, 0)),  # w1,w2 stack
            pl.BlockSpec((3, 1, _LANES), lambda i: (0, 0, 0)),       # bias stack
        ],
        out_specs=pl.BlockSpec((tile_b, _LANES), lambda i: (i, 0)),
        compiler_params=pltpu.CompilerParams(
            dimension_semantics=("parallel",)),
    )(x_pad, w0p, w12, bs)

    return out[:batch, :out_size]


def init_params(key, in_size, layers, out_size):
    """Deterministic init mimicking torch.nn.Linear (uniform +/- 1/sqrt(fan_in))."""
    sizes = [in_size] + list(layers) + [out_size]
    params = []
    for i in range(len(sizes) - 1):
        fan_in, fan_out = sizes[i], sizes[i + 1]
        key, kw, kb = jax.random.split(key, 3)
        bound = 1.0 / jnp.sqrt(jnp.float32(fan_in))
        w = jax.random.uniform(kw, (fan_in, fan_out), jnp.float32, -bound, bound)
        b = jax.random.uniform(kb, (1, fan_out), jnp.float32, -bound, bound)
        params.append((w, b))
    return tuple(params)


def nn_v_reference(x, params):
    """Pure-JAX reference of the PyTorch forward, for correctness checks."""
    (w0, b0), (w1, b1), (w2, b2) = params
    h = x @ w0 + b0
    h = jnp.tanh(h)
    h = h @ w1 + b1
    h = jnp.tanh(h)
    return h @ w2 + b2


if __name__ == "__main__":
    # LunarLander-style value net: obs dim 8, hidden layers [32, 32], scalar value.
    in_size, hidden, out_size = 8, [32, 32], 1

    key = jax.random.PRNGKey(0)
    key, kx1, kx2 = jax.random.split(key, 3)
    params = init_params(key, in_size, hidden, out_size)

    # Small per-step batch (original use case): single grid tile.
    x_small = jax.random.normal(kx1, (4, in_size), dtype=jnp.float32)
    out_small = jax.block_until_ready(nn_v_forward(x_small, params))
    assert out_small.shape == (4, out_size)
    assert jnp.allclose(out_small, nn_v_reference(x_small, params),
                        atol=1e-4, rtol=1e-4)

    # Rollout-sized batch: exercises the batch grid (3 tiles of 512) + edge padding.
    x_big = jax.random.normal(kx2, (1040, in_size), dtype=jnp.float32)
    out_big = jax.block_until_ready(nn_v_forward(x_big, params))
    assert out_big.shape == (1040, out_size)
    assert jnp.allclose(out_big, nn_v_reference(x_big, params),
                        atol=1e-4, rtol=1e-4)

    print("KERNEL_OK")
</pallas_src>

<mosaic_0001>
module attributes {stable_mosaic.version = 11 : i64} {
  func.func @_mlp_kernel(%arg0: i32, %arg1: memref<8x8xf32, #tpu.memory_space<vmem>>, %arg2: memref<8x128xf32, #tpu.memory_space<vmem>>, %arg3: memref<2x128x128xf32, #tpu.memory_space<vmem>>, %arg4: memref<3x1x128xf32, #tpu.memory_space<vmem>>, %arg5: memref<8x128xf32, #tpu.memory_space<vmem>>) attributes {dimension_semantics = [#tpu.dimension_semantics<parallel>], iteration_bounds = array<i64: 1>, scalar_prefetch = 0 : i64, scratch_operands = 0 : i64, tpu.core_type = #tpu.core_type<tc>, window_params = [{transform_indices = @transform_0, window_bounds = array<i64: 8, 8>}, {pipeline_mode = #tpu.pipeline_mode<synchronous>, transform_indices = @transform_1, window_bounds = array<i64: 8, 128>}, {pipeline_mode = #tpu.pipeline_mode<synchronous>, transform_indices = @transform_2, window_bounds = array<i64: 2, 128, 128>}, {pipeline_mode = #tpu.pipeline_mode<synchronous>, transform_indices = @transform_3, window_bounds = array<i64: 3, 1, 128>}, {transform_indices = @transform_4, window_bounds = array<i64: 8, 128>}]} {
    %c0 = arith.constant 0 : index
    %c0_0 = arith.constant 0 : index
    %0 = vector.load %arg1[%c0, %c0_0] : memref<8x8xf32, #tpu.memory_space<vmem>>, vector<8x8xf32>
    %c0_1 = arith.constant 0 : index
    %c0_2 = arith.constant 0 : index
    %1 = vector.load %arg2[%c0_1, %c0_2] : memref<8x128xf32, #tpu.memory_space<vmem>>, vector<8x128xf32>
    %cst = arith.constant dense<0.000000e+00> : vector<8x128xf32>
    %2 = tpu.matmul %0, %1, %cst {dimension_numbers = #tpu.dot_dimension_numbers<[1], [0], [0], [1], [0, 0, 1, 1], [], []>} : vector<8x8xf32>, vector<8x128xf32>, vector<8x128xf32> -> vector<8x128xf32>
    %c0_3 = arith.constant 0 : index
    %c0_4 = arith.constant 0 : index
    %c0_5 = arith.constant 0 : index
    %3 = vector.load %arg4[%c0_3, %c0_4, %c0_5] : memref<3x1x128xf32, #tpu.memory_space<vmem>>, vector<1x1x128xf32>
    %4 = vector.shape_cast %3 : vector<1x1x128xf32> to vector<1x128xf32>
    %5 = vector.broadcast %4 : vector<1x128xf32> to vector<8x128xf32>
    %6 = arith.addf %2, %5 : vector<8x128xf32>
    %7 = math.tanh %6 : vector<8x128xf32>
    %c0_6 = arith.constant 0 : index
    %c0_7 = arith.constant 0 : index
    %c0_8 = arith.constant 0 : index
    %8 = vector.load %arg3[%c0_6, %c0_7, %c0_8] : memref<2x128x128xf32, #tpu.memory_space<vmem>>, vector<1x128x128xf32>
    %9 = vector.shape_cast %8 : vector<1x128x128xf32> to vector<128x128xf32>
    %cst_9 = arith.constant dense<0.000000e+00> : vector<8x128xf32>
    %10 = tpu.matmul %7, %9, %cst_9 {dimension_numbers = #tpu.dot_dimension_numbers<[1], [0], [0], [1], [0, 0, 1, 1], [], []>} : vector<8x128xf32>, vector<128x128xf32>, vector<8x128xf32> -> vector<8x128xf32>
    %c1 = arith.constant 1 : index
    %c0_10 = arith.constant 0 : index
    %c0_11 = arith.constant 0 : index
    %11 = vector.load %arg4[%c1, %c0_10, %c0_11] : memref<3x1x128xf32, #tpu.memory_space<vmem>>, vector<1x1x128xf32>
    %12 = vector.shape_cast %11 : vector<1x1x128xf32> to vector<1x128xf32>
    %13 = vector.broadcast %12 : vector<1x128xf32> to vector<8x128xf32>
    %14 = arith.addf %10, %13 : vector<8x128xf32>
    %15 = math.tanh %14 : vector<8x128xf32>
    %c1_12 = arith.constant 1 : index
    %c0_13 = arith.constant 0 : index
    %c0_14 = arith.constant 0 : index
    %16 = vector.load %arg3[%c1_12, %c0_13, %c0_14] : memref<2x128x128xf32, #tpu.memory_space<vmem>>, vector<1x128x128xf32>
    %17 = vector.shape_cast %16 : vector<1x128x128xf32> to vector<128x128xf32>
    %cst_15 = arith.constant dense<0.000000e+00> : vector<8x128xf32>
    %18 = tpu.matmul %15, %17, %cst_15 {dimension_numbers = #tpu.dot_dimension_numbers<[1], [0], [0], [1], [0, 0, 1, 1], [], []>} : vector<8x128xf32>, vector<128x128xf32>, vector<8x128xf32> -> vector<8x128xf32>
    %c2 = arith.constant 2 : index
    %c0_16 = arith.constant 0 : index
    %c0_17 = arith.constant 0 : index
    %19 = vector.load %arg4[%c2, %c0_16, %c0_17] : memref<3x1x128xf32, #tpu.memory_space<vmem>>, vector<1x1x128xf32>
    %20 = vector.shape_cast %19 : vector<1x1x128xf32> to vector<1x128xf32>
    %21 = vector.broadcast %20 : vector<1x128xf32> to vector<8x128xf32>
    %22 = arith.addf %18, %21 : vector<8x128xf32>
    %c0_18 = arith.constant 0 : index
    %c0_19 = arith.constant 0 : index
    %23 = vector.load %arg5[%c0_18, %c0_19] : memref<8x128xf32, #tpu.memory_space<vmem>>, vector<8x128xf32>
    tpu.vector_store %arg5[%c0_18, %c0_19], %22 {strides = array<i32>} : memref<8x128xf32, #tpu.memory_space<vmem>>, vector<8x128xf32>,
    return
  }
  func.func @transform_0(%arg0: i32) -> (i32, i32) {
    %c0_i32 = arith.constant 0 : i32
    %c0_i32_0 = arith.constant 0 : i32
    return %arg0, %c0_i32 : i32, i32
  }
  func.func @transform_1(%arg0: i32) -> (i32, i32) {
    %c0_i32 = arith.constant 0 : i32
    %c0_i32_0 = arith.constant 0 : i32
    %c0_i32_1 = arith.constant 0 : i32
    return %c0_i32, %c0_i32_0 : i32, i32
  }
  func.func @transform_2(%arg0: i32) -> (i32, i32, i32) {
    %c0_i32 = arith.constant 0 : i32
    %c0_i32_0 = arith.constant 0 : i32
    %c0_i32_1 = arith.constant 0 : i32
    %c0_i32_2 = arith.constant 0 : i32
    return %c0_i32, %c0_i32_0, %c0_i32_1 : i32, i32, i32
  }
  func.func @transform_3(%arg0: i32) -> (i32, i32, i32) {
    %c0_i32 = arith.constant 0 : i32
    %c0_i32_0 = arith.constant 0 : i32
    %c0_i32_1 = arith.constant 0 : i32
    %c0_i32_2 = arith.constant 0 : i32
    return %c0_i32, %c0_i32_0, %c0_i32_1 : i32, i32, i32
  }
  func.func @transform_4(%arg0: i32) -> (i32, i32) {
    %c0_i32 = arith.constant 0 : i32
    %c0_i32_0 = arith.constant 0 : i32
    return %arg0, %c0_i32 : i32, i32
  }
}

</mosaic_0001>

<bundles_post_ra>
// kernel: tpu_custom_call.1
= control target key start
LH: loop header
LB: loop body
LE: loop exit
PB: predicated region body
PF: predicated region fallthrough
CT: control target
= control target key end

     0   :  { %9 = vsyncpa [#allocation3], 0  ;;  %s728_s0 = inlined_call_operand.hbm [shape: f32[8,8], index: 0, kind: input, shape index: {}]   ;;  %s729_s1 = inlined_call_operand.hbm [shape: f32[8,128], index: 1, kind: input, shape index: {}]   ;;  %s730_s2 = inlined_call_operand.hbm [shape: f32[2,128,128], index: 2, kind: input, shape index: {}]   ;;  %s731_s3 = inlined_call_operand.vmem [shape: f32[3,1,128], index: 3, kind: input, shape index: {}]   ;;  %s732_s4 = inlined_call_operand.hbm [shape: f32[8,128], index: 4, kind: output, shape index: {}]  }
   0x1   :  { %10 = vsyncpa [#allocation6], 0 }
   0x2   :  { %11 = vsyncpa [#allocation4], 0  ;;  %s618_s15 = smov [#allocation5]   ;;  %s619_s17 = smov [#allocation2]  }
   0x3   :  { %s28_s16 = sshll.u32 %s618_s15, 4  ;;  %s18_s18 = sshll.u32 %s619_s17, 4  ;;  %s29_s16 = int_to_ptr.vmem [resolvable:$true] %s28_s16  ;;  %s19_s18 = int_to_ptr.vmem [resolvable:$true] %s18_s18 }
   0x4   :  { %s524_s21 = scalar_lea.hbm %s729_s1, 128 }
   0x5   :  { %p525_p0 = scmp.ne.s32.totalorder %s729_s1, %s524_s21  ;;  %p528_p1 = scmp.lt.u32.totalorder %s524_s21, %s729_s1 }
   0x7   :  { %p530_p2 = pnand %p528_p1, %p525_p0 }
   0x9   :  { %533 = shalt.err (!%p530_p2)
}
   0xa   :  { %s534_s26 = scalar_lea.vmem %s29_s16, 128  ;;  %p539_p4 = scmp.lt.s32.totalorder %s29_s16, %s29_s16 }
   0xb   :  { %p535_p3 = scmp.ne.s32.totalorder %s29_s16, %s534_s26  ;;  %p540_p5 = scmp.lt.s32.totalorder %s534_s26, %s534_s26 }
   0xd   :  { %p541_p6 = por %p540_p5, %p539_p4 }
   0xf   :  { %p542_p7 = pnand %p541_p6, %p535_p3 }
  0x11   :  { %545 = shalt.err (!%p542_p7)
}
  0x12   :  { %31 = dma.hbm_to_vmem [thread:$0]  %s729_s1, 128, %s29_s16, [#allocation6]  }
  0x13   :  { %s546_s5 = scalar_lea.hbm %s728_s0, 128 }
  0x14   :  { %p547_p8 = scmp.ne.s32.totalorder %s728_s0, %s546_s5  ;;  %p550_p9 = scmp.lt.u32.totalorder %s546_s5, %s728_s0 }
  0x16   :  { %p552_p10 = pnand %p550_p9, %p547_p8 }
  0x18   :  { %555 = shalt.err (!%p552_p10)
}
  0x19   :  { %s556_s10 = scalar_lea.vmem %s19_s18, 128  ;;  %p561_p12 = scmp.lt.s32.totalorder %s19_s18, %s19_s18 }
  0x1a   :  { %p557_p11 = scmp.ne.s32.totalorder %s19_s18, %s556_s10  ;;  %p562_p13 = scmp.lt.s32.totalorder %s556_s10, %s556_s10 }
  0x1c   :  { %p563_p0 = por %p562_p13, %p561_p12 }
  0x1e   :  { %p564_p1 = pnand %p563_p0, %p557_p11 }
  0x20   :  { %567 = shalt.err (!%p564_p1)
}
  0x21   :  { %21 = dma.hbm_to_vmem [thread:$0]  %s728_s0, 128, %s19_s18, [#allocation3]  }
  0x22   :  { %s620_s12 = smov [#allocation7]   ;;  %s568_s16 = scalar_lea.hbm %s730_s2, 4096 }
  0x23   :  { %s37_s13 = sshll.u32 %s620_s12, 4  ;;  %p569_p2 = scmp.ne.s32.totalorder %s730_s2, %s568_s16  ;;  %s38_s13 = int_to_ptr.vmem [resolvable:$true] %s37_s13 }
  0x24   :  { %p572_p3 = scmp.lt.u32.totalorder %s568_s16, %s730_s2 }
  0x26   :  { %p574_p4 = pnand %p572_p3, %p569_p2 }
  0x28   :  { %577 = shalt.err (!%p574_p4)
}
  0x29   :  { %s578_s22 = scalar_lea.vmem %s38_s13, 4096  ;;  %p583_p6 = scmp.lt.s32.totalorder %s38_s13, %s38_s13 }
  0x2a   :  { %p579_p5 = scmp.ne.s32.totalorder %s38_s13, %s578_s22  ;;  %p584_p7 = scmp.lt.s32.totalorder %s578_s22, %s578_s22 }
  0x2c   :  { %p585_p8 = por %p584_p7, %p583_p6 }
  0x2e   :  { %p586_p9 = pnand %p585_p8, %p579_p5 }
  0x30   :  { %589 = shalt.err (!%p586_p9)
}
  0x31   :  { %s621_s0 = smov 128   ;;  %s622_s18 = smov 8  }
  0x32   :  { %43 = dma.hbm_to_vmem [thread:$0]  %s730_s2, 4096, %s38_s13, [#allocation6], %s621_s0, %s621_s0, %s622_s18  }
  0x33   :  { %612 = dma.done.wait [#allocation3], 128  }
  0x34   :  { %613 = vsyncadd [#allocation3], 4294967168 }
  0x35   :  { %614 = dma.done.wait [#allocation6], 4224  }
  0x36   :  { %615 = vsyncadd [#allocation6], 4294963072  ;;  %v623_v0 = vmov 0.0   ;;  %vm624_vm0 = vmmov 0   ;;  %v625_v1 = vmov 0.0|0.0   ;;  %vm64_vm1 = vcmask 64512  }
  0x37   :  { %388 = vmatprep.subr.mxu0 %v623_v0  ;;  %390 = vmatprep.mubr.msk.f32.mxu0 %vm624_vm0, %v623_v0  ;;  %v56_v2 = vld [vmem:[#allocation5] sm:$0xff]  ;;  %v55_v3 = vld [vmem:[#allocation2] sm:$0xff]  ;;  %v139_v4 = vld [vmem:[#allocation7] sm:$0xff]  ;;  %s626_s30 = smov [#allocation8]  }
  0x38   :  { %463 = vmatprep.subr.bf16.mxu1 %v625_v1  ;;  %425 = vmatprep.mubr.msk.f32.mxu1 %vm624_vm0, %v623_v0  ;;  %v140_v5 = vld [vmem:[#allocation7 + $0x8] sm:$0xff]  ;;  %v141_v6 = vld [vmem:[#allocation7 + $0x10] sm:$0xff]  ;;  %v142_v7 = vld [vmem:[#allocation7 + $0x18] sm:$0xff]  ;;  %s336_s5 = sshll.u32 %s626_s30, 4  ;;  %s337_s5 = int_to_ptr.vmem [resolvable:$true] %s336_s5 }
  0x39   :  { %389 = vmatpush3.msra.mxu0 %v56_v2  ;;  %v464_v8 = vpack.c.bf16 %v140_v5, %v139_v4  ;;  %v467_v9 = vpack.c.bf16 %v142_v7, %v141_v6  ;;  %v143_v10 = vld [vmem:[#allocation7 + $0x20] sm:$0xff]  ;;  %v144_v11 = vld [vmem:[#allocation7 + $0x28] sm:$0xff]  ;;  %v145_v13 = vld [vmem:[#allocation7 + $0x30] sm:$0xff]  ;;  %s590_s6 = scalar_lea.vmem %s337_s5, 128  ;;  %p595_p11 = scmp.lt.s32.totalorder %s337_s5, %s337_s5 }
  0x3a   :  { %391 = vmatmul.mubr.msk.f32.vlgmr.msra.gmra.mrb[0].mxu0 %vm64_vm1, %v55_v3  ;;  %487 = vmatprep.subr.bf16.mxu0 %v625_v1  ;;  %v470_v12 = vpack.c.bf16 %v144_v11, %v143_v10  ;;  %v146_v14 = vld [vmem:[#allocation7 + $0x38] sm:$0xff]  ;;  %v147_v16 = vld [vmem:[#allocation7 + $0x40] sm:$0xff]  ;;  %v148_v17 = vld [vmem:[#allocation7 + $0x48] sm:$0xff]  ;;  %p591_p10 = scmp.ne.s32.totalorder %s337_s5, %s590_s6  ;;  %p596_p12 = scmp.lt.s32.totalorder %s590_s6, %s590_s6 }
  0x3b   :  { %460 = vmatprep.mubr.msk.f32.mxu0 %vm624_vm0, %v623_v0  ;;  %465 = vmatpush3.bf16.msra.mxu1 %v464_v8  ;;  %v473_v15 = vpack.c.bf16 %v146_v14, %v145_v13  ;;  %v476_v18 = vpack.c.bf16 %v148_v17, %v147_v16  ;;  %v149_v19 = vld [vmem:[#allocation7 + $0x50] sm:$0xff]  ;;  %v150_v20 = vld [vmem:[#allocation7 + $0x58] sm:$0xff]  ;;  %v151_v22 = vld [vmem:[#allocation7 + $0x60] sm:$0xff] }
  0x3c   :  { %466 = vmatprep.subr.bf16.mxu1 %v625_v1  ;;  %v479_v21 = vpack.c.bf16 %v150_v20, %v149_v19  ;;  %v152_v23 = vld [vmem:[#allocation7 + $0x68] sm:$0xff]  ;;  %v153_v25 = vld [vmem:[#allocation7 + $0x70] sm:$0xff]  ;;  %v154_v26 = vld [vmem:[#allocation7 + $0x78] sm:$0xff]  ;;  %p597_p13 = por %p596_p12, %p595_p11 }
  0x3d   :  { %v482_v24 = vpack.c.bf16 %v152_v23, %v151_v22  ;;  %v485_v27 = vpack.c.bf16 %v154_v26, %v153_v25  ;;  %v235_v28 = vld [vmem:[#allocation7 + $0x80] sm:$0xff]  ;;  %v236_v29 = vld [vmem:[#allocation7 + $0x88] sm:$0xff]  ;;  %v237_v30 = vld [vmem:[#allocation7 + $0x90] sm:$0xff] }
  0x3e   :  { %v488_v31 = vpack.c.bf16 %v236_v29, %v235_v28  ;;  %v238_v32 = vld [vmem:[#allocation7 + $0x98] sm:$0xff]  ;;  %v239_v34 = vld [vmem:[#allocation7 + $0xa0] sm:$0xff]  ;;  %v240_v35 = vld [vmem:[#allocation7 + $0xa8] sm:$0xff]  ;;  %p598_p0 = pnand %p597_p13, %p591_p10 }
  0x3f   :  { %468 = vmatpush3.bf16.msra.mxu1 %v467_v9  ;;  %v491_v33 = vpack.c.bf16 %v238_v32, %v237_v30  ;;  %v494_v36 = vpack.c.bf16 %v240_v35, %v239_v34  ;;  %v241_v37 = vld [vmem:[#allocation7 + $0xb0] sm:$0xff]  ;;  %v242_v38 = vld [vmem:[#allocation7 + $0xb8] sm:$0xff]  ;;  %v243_v40 = vld [vmem:[#allocation7 + $0xc0] sm:$0xff] }
  0x40   :  { %469 = vmatprep.subr.bf16.mxu1 %v625_v1  ;;  %489 = vmatpush3.bf16.msra.mxu0 %v488_v31  ;;  %v497_v39 = vpack.c.bf16 %v242_v38, %v241_v37  ;;  %v244_v41 = vld [vmem:[#allocation7 + $0xc8] sm:$0xff]  ;;  %v346_v43 = vld [vmem:[%s731_s3] ss:$0 sm:$0xff]  ;;  %v246_v49 = vld [vmem:[#allocation7 + $0xd8] sm:$0xff] }
  0x41   :  { %490 = vmatprep.subr.bf16.mxu0 %v625_v1  ;;  %v500_v42 = vpack.c.bf16 %v244_v41, %v243_v40  ;;  %v245_v48 = vld [vmem:[#allocation7 + $0xd0] sm:$0xff]  ;;  %v247_v51 = vld [vmem:[#allocation7 + $0xe0] sm:$0xff]  ;;  %v248_v52 = vld [vmem:[#allocation7 + $0xe8] sm:$0xff] }
  0x42   :  { %v503_v50 = vpack.c.bf16 %v246_v49, %v245_v48  ;;  %v506_v53 = vpack.c.bf16 %v248_v52, %v247_v51  ;;  %v249_v54 = vld [vmem:[#allocation7 + $0xf0] sm:$0xff]  ;;  %v250_v55 = vld [vmem:[#allocation7 + $0xf8] sm:$0xff] }
  0x43   :  { %471 = vmatpush3.bf16.msra.mxu1 %v470_v12  ;;  %v509_v56 = vpack.c.bf16 %v250_v55, %v249_v54  ;;  %v349_v57 = vld [vmem:[%s731_s3 + $0x1] ss:$0 sm:$0xff]  ;;  %v351_v62 = vld [vmem:[%s731_s3 + $0x2] ss:$0 sm:$0xff] }
  0x44   :  { %472 = vmatprep.subr.bf16.mxu1 %v625_v1  ;;  %492 = vmatpush3.bf16.msra.mxu0 %v491_v33 }
  0x45   :  { %493 = vmatprep.subr.bf16.mxu0 %v625_v1 }
  0x47   :  { %474 = vmatpush3.bf16.msra.mxu1 %v473_v15 }
  0x48   :  { %475 = vmatprep.subr.bf16.mxu1 %v625_v1  ;;  %495 = vmatpush3.bf16.msra.mxu0 %v494_v36 }
  0x49   :  { %496 = vmatprep.subr.bf16.mxu0 %v625_v1 }
  0x4b   :  { %477 = vmatpush3.bf16.msra.mxu1 %v476_v18 }
  0x4c   :  { %478 = vmatprep.subr.bf16.mxu1 %v625_v1  ;;  %498 = vmatpush3.bf16.msra.mxu0 %v497_v39 }
  0x4d   :  { %499 = vmatprep.subr.bf16.mxu0 %v625_v1 }
  0x4f   :  { %480 = vmatpush3.bf16.msra.mxu1 %v479_v21 }
  0x50   :  { %481 = vmatprep.subr.bf16.mxu1 %v625_v1  ;;  %501 = vmatpush3.bf16.msra.mxu0 %v500_v42 }
  0x51   :  { %502 = vmatprep.subr.bf16.mxu0 %v625_v1 }
  0x53   :  { %483 = vmatpush3.bf16.msra.mxu1 %v482_v24 }
  0x54   :  { %484 = vmatprep.subr.bf16.mxu1 %v625_v1  ;;  %504 = vmatpush3.bf16.msra.mxu0 %v503_v50 }
  0x55   :  { %505 = vmatprep.subr.bf16.mxu0 %v625_v1 }
  0x57   :  { %486 = vmatpush3.bf16.msra.mxu1 %v485_v27 }
  0x58   :  { %507 = vmatpush3.bf16.msra.mxu0 %v506_v53 }
  0x59   :  { %508 = vmatprep.subr.bf16.mxu0 %v625_v1 }
  0x5c   :  { %510 = vmatpush3.bf16.msra.mxu0 %v509_v56 }
 0x10d   :  { %v134_v44 = vpop.f32.mrb[0].mxu0 }
 0x10e   :  { %v135_v45 = vadd.f32 %v346_v43, %v134_v44  ;;  %v392_v46 = vpop.f32.mrb[1].mxu0 }
 0x110   :  { %520 = vtanh.f32 %v135_v45 }
 0x11a   :  { %v521_v47 = vpop.eup %520 }
 0x11b   :  { %426 = vmatmul.mubr.f32.vlgmr.msra.gmra.mrb[0].mxu1 %v521_v47 }
 0x1ee   :  { %v229_v58 = vpop.f32.mrb[0].mxu1 }
 0x1ef   :  { %v230_v59 = vadd.f32 %v349_v57, %v229_v58  ;;  %v427_v60 = vpop.f32.mrb[1].mxu1 }
 0x1f1   :  { %522 = vtanh.f32 %v230_v59 }
 0x1fb   :  { %v523_v61 = vpop.eup %522 }
 0x1fc   :  { %461 = vmatmul.mubr.f32.vlgmr.msra.gmra.mrb[2].mxu0 %v523_v61 }
 0x2cf   :  { %v325_v63 = vpop.f32.mrb[2].mxu0 }
 0x2d0   :  { %v326_v0 = vadd.f32 %v351_v62, %v325_v63  ;;  %v462_v1 = vpop.f32.mrb[3].mxu0 }
 0x2d2   :  { %329 = vst [vmem:[#allocation8] sm:$0xff] %v326_v0 }
 0x2d3   :  { %601 = shalt.err (!%p598_p0)
}
 0x2d4   :  { %s602_s9 = scalar_lea.hbm %s732_s4, 128 }
 0x2d5   :  { %p603_p1 = scmp.ne.s32.totalorder %s732_s4, %s602_s9  ;;  %p606_p2 = scmp.lt.u32.totalorder %s602_s9, %s732_s4 }
 0x2d7   :  { %p608_p3 = pnand %p606_p2, %p603_p1 }
 0x2d9   :  { %611 = shalt.err (!%p608_p3)
}
 0x2da   :  { %339 = dma.vmem_to_hbm [thread:$0]  %s337_s5, 128, %s732_s4, [#allocation4]  }
 0x2db   :  { %616 = dma.done.wait [#allocation4], 128  }
 0x2dc   :  { %617 = vsyncadd [#allocation4], 4294967168 }
 0x2dd   :  { %343 = vsyncpa [#allocation3], 1 }
 0x2de   :  { %344 = vsyncpa [#allocation6], 1 }
 0x2df   :  { %345 = vsyncpa [#allocation4], 1 }

</bundles_post_ra>
